<compile_context>
chip_gen: v6e
topology: v6e:2x2x1
jax: 0.10.0
libtpu: 0.0.40
codegen_flags: <defaults>
</compile_context>

<pallas_src>
import jax
import jax.numpy as jnp
from jax.experimental import pallas as pl
from jax.experimental.pallas import tpu as pltpu


_TQ_CANDS = (2048, 1024, 512, 256, 128, 64, 32, 16, 8)
_TK_CANDS = (2048, 1024, 512, 256, 128)


def _round_up(x, m):
    return ((x + m - 1) // m) * m


def _vmem_limit_bytes():
    """Generation-aware scoped-VMEM limit (~3/4 of physical per-core VMEM)."""
    try:
        cap = int(pltpu.get_tpu_info().vmem_capacity_bytes)
    except Exception:
        cap = 64 * 1024 * 1024          # conservative fallback (v7x per-TC size)
    return max(32 * 1024 * 1024, (cap * 3) // 4)


# ---------------------------------------------------------------------------
# Kernels
# ---------------------------------------------------------------------------

def _gaussian_kernel_2d(q_ref, k_ref, o_ref):
    # q_ref: (tq, C), k_ref: (C, tk), o_ref: (tq, tk)
    q = q_ref[...]
    k = k_ref[...]
    qk = jnp.dot(q, k, preferred_element_type=jnp.float32)          # MXU, f32 acc
    qf = q.astype(jnp.float32)
    kf = k.astype(jnp.float32)
    qn = -0.5 * jnp.sum(qf * qf, axis=1, keepdims=True)             # (tq, 1)  f32
    kn = -0.5 * jnp.sum(kf * kf, axis=0, keepdims=True)             # (1, tk)  f32
    s = jnp.minimum(qk + qn + kn, 0.0)                              # dist >= 0 guard
    o_ref[...] = jnp.exp(s).astype(o_ref.dtype)                     # EUP exp


def _gaussian_kernel_packed(qp_ref, kbd_ref, m_ref, kn_ref, o_ref):
    # qp_ref:  (tq, H*C)   packed query
    # kbd_ref: (H*C, H*K)  block-diagonal key
    # m_ref:   (H*C, H*K)  f32 mask with -0.5 on matching-head blocks
    # kn_ref:  (1, H*K)    f32 packed key norms
    # o_ref:   (tq, H*K)   lane-dense output
    qp = qp_ref[...]
    qk = jnp.dot(qp, kbd_ref[...], preferred_element_type=jnp.float32)
    qpf = qp.astype(jnp.float32)
    qn = jnp.dot(qpf * qpf, m_ref[...], preferred_element_type=jnp.float32)
    s = jnp.minimum(qk + qn + kn_ref[...], 0.0)
    o_ref[...] = jnp.exp(s).astype(o_ref.dtype)


# ---------------------------------------------------------------------------
# General (per-head) path
# ---------------------------------------------------------------------------

def _pick_tiles_2d(Q, K, C, in_isz, out_isz, budget):
    q_cap = _round_up(Q, 8)
    tq_cands = [t for t in _TQ_CANDS if t <= q_cap] or [q_cap]
    if K < 128:
        tk_cands = [K]                   # full (lane-masked) dim; no padding
    else:
        k_cap = _round_up(K, 128)
        tk_cands = [t for t in _TK_CANDS if t <= k_cap] or [128]
    best = None
    for tq in tq_cands:
        for tk in tk_cands:
            # double-buffered in/out tiles + f32 intermediates inside the kernel
            need = (2 * (tq * C + C * tk) * in_isz
                    + 2 * tq * tk * out_isz
                    + 2 * tq * tk * 4)
            if need > budget:
                continue
            qp = _round_up(Q, tq)
            kp = K if K < 128 else _round_up(K, tk)
            pad_waste = (qp * kp) / float(Q * K)
            score = (tq * tk) / pad_waste          # big tiles, low padding waste
            if best is None or score > best[0]:
                best = (score, tq, tk)
    if best is None:
        return tq_cands[-1], tk_cands[-1]
    return best[1], best[2]


def _forward_per_head(q_r, k_r, out_dtype):
    G, Q, C = q_r.shape
    K = k_r.shape[-1]
    in_isz = jnp.dtype(q_r.dtype).itemsize
    out_isz = jnp.dtype(out_dtype).itemsize
    vlimit = _vmem_limit_bytes()
    tq, tk = _pick_tiles_2d(Q, K, C, in_isz, out_isz, (vlimit * 7) // 10)

    Qp = _round_up(Q, tq)
    Kp = K if tk == K else _round_up(K, tk)
    if Qp != Q:
        q_r = jnp.pad(q_r, ((0, 0), (0, Qp - Q), (0, 0)))
    if Kp != K:
        k_r = jnp.pad(k_r, ((0, 0), (0, 0), (0, Kp - K)))

    grid = (G, Qp // tq, Kp // tk)
    out = pl.pallas_call(
        _gaussian_kernel_2d,
        out_shape=jax.ShapeDtypeStruct((G, Qp, Kp), out_dtype),
        grid_spec=pltpu.PrefetchScalarGridSpec(
            num_scalar_prefetch=0,
            grid=grid,
            in_specs=[
                pl.BlockSpec((pl.Squeezed(), tq, C), lambda g, qi, ki: (g, qi, 0)),
                pl.BlockSpec((pl.Squeezed(), C, tk), lambda g, qi, ki: (g, 0, ki)),
            ],
            out_specs=pl.BlockSpec((pl.Squeezed(), tq, tk),
                                   lambda g, qi, ki: (g, qi, ki)),
        ),
        compiler_params=pltpu.CompilerParams(
            dimension_semantics=("parallel", "parallel", "parallel"),
            vmem_limit_bytes=vlimit,
        ),
        cost_estimate=pl.CostEstimate(
            flops=2 * G * Qp * Kp * C,
            transcendentals=G * Qp * Kp,
            bytes_accessed=(G * (Qp * C + C * Kp) * in_isz
                            + G * Qp * Kp * out_isz),
        ),
    )(q_r, k_r)

    if Qp != Q or Kp != K:
        out = out[:, :Q, :K]
    return out


# ---------------------------------------------------------------------------
# Head-packed (small per-head K) path
# ---------------------------------------------------------------------------

def _forward_head_packed(query, key, out_dtype):
    B, H, Q, C = query.shape
    K = key.shape[-1]
    HC, HK = H * C, H * K
    in_isz = jnp.dtype(query.dtype).itemsize
    out_isz = jnp.dtype(out_dtype).itemsize
    vlimit = _vmem_limit_bytes()
    budget = (vlimit * 7) // 10

    # Pack heads along the lane axis: q -> (B, Q, H*C); block-diagonal key ->
    # (B, H*C, H*K) so one 2-D MXU matmul covers all heads per q-tile and the
    # output stores are lane-dense over H*K.
    qp = query.transpose(0, 2, 1, 3).reshape(B, Q, HC)
    eye = jnp.eye(H, dtype=key.dtype)
    kbd = (key[:, :, :, None, :] * eye[None, :, None, :, None])      # (B,H,C,H,K)
    kbd = kbd.reshape(B, HC, HK).astype(key.dtype)
    # -0.5 block mask: (q*q) @ m_mat gives the packed -0.5*||q||^2 term in f32.
    m_mat = (-0.5) * jnp.kron(jnp.eye(H, dtype=jnp.float32),
                              jnp.ones((C, K), jnp.float32))          # (HC, HK)
    kf = key.astype(jnp.float32)
    kn = (-0.5 * jnp.sum(kf * kf, axis=2)).reshape(B, 1, HK)          # f32 norms

    q_cap = _round_up(Q, 8)
    tq = None
    for t in _TQ_CANDS:
        if t > q_cap:
            continue
        need = (2 * t * HC * in_isz + 2 * HC * HK * in_isz + HC * HK * 4
                + 2 * HK * 4 + 2 * t * HK * out_isz + 2 * t * HK * 4)
        if need <= budget:
            tq = t
            break
    if tq is None:
        tq = 8
    Qp = _round_up(Q, tq)
    if Qp != Q:
        qp = jnp.pad(qp, ((0, 0), (0, Qp - Q), (0, 0)))

    grid = (B, Qp // tq)
    out = pl.pallas_call(
        _gaussian_kernel_packed,
        out_shape=jax.ShapeDtypeStruct((B, Qp, HK), out_dtype),
        grid_spec=pltpu.PrefetchScalarGridSpec(
            num_scalar_prefetch=0,
            grid=grid,
            in_specs=[
                pl.BlockSpec((pl.Squeezed(), tq, HC), lambda b, qi: (b, qi, 0)),
                pl.BlockSpec((pl.Squeezed(), HC, HK), lambda b, qi: (b, 0, 0)),
                pl.BlockSpec((HC, HK), lambda b, qi: (0, 0)),
                pl.BlockSpec((pl.Squeezed(), 1, HK), lambda b, qi: (b, 0, 0)),
            ],
            out_specs=pl.BlockSpec((pl.Squeezed(), tq, HK),
                                   lambda b, qi: (b, qi, 0)),
        ),
        compiler_params=pltpu.CompilerParams(
            dimension_semantics=("parallel", "parallel"),
            vmem_limit_bytes=vlimit,
        ),
        cost_estimate=pl.CostEstimate(
            flops=4 * B * Qp * HK * HC,          # qk matmul + norm matmul
            transcendentals=B * Qp * HK,
            bytes_accessed=(B * Qp * HC * in_isz + B * HC * HK * in_isz
                            + B * HK * 4 + B * Qp * HK * out_isz),
        ),
    )(qp, kbd, m_mat, kn)

    out = out[:, :Q, :].reshape(B, Q, H, K)
    return jnp.transpose(out, (0, 2, 1, 3))


# ---------------------------------------------------------------------------
# Public entry point
# ---------------------------------------------------------------------------

def subtraction_reduce_gaussian(query, key):
    """query: (B, H, Q, C), key: (B, H, C, K) -> (B, H, Q, K)."""
    assert query.ndim == 4 and key.ndim == 4
    assert query.shape[-1] == key.shape[-2]
    assert query.shape[:2] == key.shape[:2]
    if key.dtype != query.dtype:
        key = key.astype(query.dtype)
    B, H, Q, C = query.shape
    K = key.shape[-1]
    out_dtype = query.dtype

    # Small per-head K: pack heads along the lane axis for lane-dense stores.
    use_packed = (K < 128) and (H >= 2) and (H * C <= 512) and (H * K <= 2048)
    if use_packed:
        return _forward_head_packed(query, key, out_dtype)

    # TODO(synk): for f32 inputs the rank-1 norm terms could also be folded into
    # the MXU contraction (augment q with [qn, 1] and k with [1; kn]); kept as
    # in-kernel f32 adds so bf16 inputs never round the norm terms below f32.
    q_r = query.reshape(B * H, Q, C)
    k_r = key.reshape(B * H, C, K)
    out = _forward_per_head(q_r, k_r, out_dtype)
    return out.reshape(B, H, Q, K)


def _reference(query, key):
    # pure-JAX reference: exp(-0.5 * ||q - k||^2) via direct subtraction.
    q = query.astype(jnp.float32)[..., :, :, None]        # (B, H, Q, C, 1)
    k = key.astype(jnp.float32)[..., None, :, :]           # (B, H, 1, C, K)
    dist = jnp.sum((q - k) ** 2, axis=-2)                  # (B, H, Q, K)
    return jnp.exp(-0.5 * dist)


if __name__ == "__main__":
    root = jax.random.PRNGKey(0)
    k1, k2, k3, k4 = jax.random.split(root, 4)
    fwd = jax.jit(subtraction_reduce_gaussian)

    # 1) SOFT-style small-head shape -> head-packed (lane-dense) path.
    #    batch=2, heads=4, q_len=16, channels=32, k_len=16.
    q1 = jax.random.normal(k1, (2, 4, 16, 32), dtype=jnp.float32) * 0.5
    key1 = jax.random.normal(k2, (2, 4, 32, 16), dtype=jnp.float32) * 0.5
    out1 = jax.block_until_ready(fwd(q1, key1))
    ref1 = _reference(q1, key1)
    assert out1.shape == (2, 4, 16, 16)
    assert jnp.allclose(out1, ref1, atol=2e-5, rtol=2e-5), "packed-path mismatch"

    # 2) Larger per-head K with non-divisible Q/K -> general tiled path + padding.
    q2 = jax.random.normal(k3, (1, 2, 20, 32), dtype=jnp.float32) * 0.5
    key2 = jax.random.normal(k4, (1, 2, 32, 160), dtype=jnp.float32) * 0.5
    out2 = jax.block_until_ready(fwd(q2, key2))
    ref2 = _reference(q2, key2)
    assert out2.shape == (1, 2, 20, 160)
    assert jnp.allclose(out2, ref2, atol=2e-5, rtol=2e-5), "tiled-path mismatch"

    print("KERNEL_OK")
</pallas_src>

<mosaic_0001>
module attributes {stable_mosaic.version = 11 : i64} {
  func.func @_gaussian_kernel_packed(%arg0: i32, %arg1: i32, %arg2: memref<1x16x128xf32, #tpu.memory_space<vmem>>, %arg3: memref<1x128x64xf32, #tpu.memory_space<vmem>>, %arg4: memref<128x64xf32, #tpu.memory_space<vmem>>, %arg5: memref<1x1x64xf32, #tpu.memory_space<vmem>>, %arg6: memref<1x16x64xf32, #tpu.memory_space<vmem>>) attributes {dimension_semantics = [#tpu.dimension_semantics<parallel>, #tpu.dimension_semantics<parallel>], iteration_bounds = array<i64: 2, 1>, scalar_prefetch = 0 : i64, scratch_operands = 0 : i64, tpu.core_type = #tpu.core_type<tc>, window_params = [{transform_indices = @transform_0, window_bounds = array<i64: 1, 16, 128>}, {transform_indices = @transform_1, window_bounds = array<i64: 1, 128, 64>}, {pipeline_mode = #tpu.pipeline_mode<synchronous>, transform_indices = @transform_2, window_bounds = array<i64: 128, 64>}, {transform_indices = @transform_3, window_bounds = array<i64: 1, 1, 64>}, {transform_indices = @transform_4, window_bounds = array<i64: 1, 16, 64>}]} {
    %c0 = arith.constant 0 : index
    %c0_0 = arith.constant 0 : index
    %c0_1 = arith.constant 0 : index
    %0 = vector.load %arg2[%c0, %c0_0, %c0_1] : memref<1x16x128xf32, #tpu.memory_space<vmem>>, vector<1x16x128xf32>
    %1 = vector.shape_cast %0 : vector<1x16x128xf32> to vector<16x128xf32>
    %c0_2 = arith.constant 0 : index
    %c0_3 = arith.constant 0 : index
    %c0_4 = arith.constant 0 : index
    %2 = vector.load %arg3[%c0_2, %c0_3, %c0_4] : memref<1x128x64xf32, #tpu.memory_space<vmem>>, vector<1x128x64xf32>
    %3 = vector.shape_cast %2 : vector<1x128x64xf32> to vector<128x64xf32>
    %cst = arith.constant dense<0.000000e+00> : vector<16x64xf32>
    %4 = tpu.matmul %1, %3, %cst {dimension_numbers = #tpu.dot_dimension_numbers<[1], [0], [0], [1], [0, 0, 1, 1], [], []>} : vector<16x128xf32>, vector<128x64xf32>, vector<16x64xf32> -> vector<16x64xf32>
    %5 = arith.mulf %1, %1 : vector<16x128xf32>
    %c0_5 = arith.constant 0 : index
    %c0_6 = arith.constant 0 : index
    %6 = vector.load %arg4[%c0_5, %c0_6] : memref<128x64xf32, #tpu.memory_space<vmem>>, vector<128x64xf32>
    %cst_7 = arith.constant dense<0.000000e+00> : vector<16x64xf32>
    %7 = tpu.matmul %5, %6, %cst_7 {dimension_numbers = #tpu.dot_dimension_numbers<[1], [0], [0], [1], [0, 0, 1, 1], [], []>} : vector<16x128xf32>, vector<128x64xf32>, vector<16x64xf32> -> vector<16x64xf32>
    %8 = arith.addf %4, %7 : vector<16x64xf32>
    %c0_8 = arith.constant 0 : index
    %c0_9 = arith.constant 0 : index
    %c0_10 = arith.constant 0 : index
    %9 = vector.load %arg5[%c0_8, %c0_9, %c0_10] : memref<1x1x64xf32, #tpu.memory_space<vmem>>, vector<1x1x64xf32>
    %10 = vector.shape_cast %9 : vector<1x1x64xf32> to vector<1x64xf32>
    %11 = vector.broadcast %10 : vector<1x64xf32> to vector<16x64xf32>
    %12 = arith.addf %8, %11 : vector<16x64xf32>
    %cst_11 = arith.constant 0.000000e+00 : f32
    %13 = vector.broadcast %cst_11 : f32 to vector<16x64xf32>
    %14 = arith.minimumf %12, %13 : vector<16x64xf32>
    %15 = math.exp %14 : vector<16x64xf32>
    %c0_12 = arith.constant 0 : index
    %c0_13 = arith.constant 0 : index
    %c0_14 = arith.constant 0 : index
    %16 = vector.load %arg6[%c0_12, %c0_13, %c0_14] : memref<1x16x64xf32, #tpu.memory_space<vmem>>, vector<1x16x64xf32>
    %17 = vector.shape_cast %16 : vector<1x16x64xf32> to vector<16x64xf32>
    %18 = vector.shape_cast %15 : vector<16x64xf32> to vector<1x16x64xf32>
    tpu.vector_store %arg6[%c0_12, %c0_13, %c0_14], %18 {strides = array<i32>} : memref<1x16x64xf32, #tpu.memory_space<vmem>>, vector<1x16x64xf32>,
    return
  }
  func.func @transform_0(%arg0: i32, %arg1: i32) -> (i32, i32, i32) {
    %c0_i32 = arith.constant 0 : i32
    %c0_i32_0 = arith.constant 0 : i32
    return %arg0, %arg1, %c0_i32 : i32, i32, i32
  }
  func.func @transform_1(%arg0: i32, %arg1: i32) -> (i32, i32, i32) {
    %c0_i32 = arith.constant 0 : i32
    %c0_i32_0 = arith.constant 0 : i32
    %c0_i32_1 = arith.constant 0 : i32
    return %arg0, %c0_i32, %c0_i32_0 : i32, i32, i32
  }
  func.func @transform_2(%arg0: i32, %arg1: i32) -> (i32, i32) {
    %c0_i32 = arith.constant 0 : i32
    %c0_i32_0 = arith.constant 0 : i32
    %c0_i32_1 = arith.constant 0 : i32
    return %c0_i32, %c0_i32_0 : i32, i32
  }
  func.func @transform_3(%arg0: i32, %arg1: i32) -> (i32, i32, i32) {
    %c0_i32 = arith.constant 0 : i32
    %c0_i32_0 = arith.constant 0 : i32
    %c0_i32_1 = arith.constant 0 : i32
    return %arg0, %c0_i32, %c0_i32_0 : i32, i32, i32
  }
  func.func @transform_4(%arg0: i32, %arg1: i32) -> (i32, i32, i32) {
    %c0_i32 = arith.constant 0 : i32
    %c0_i32_0 = arith.constant 0 : i32
    return %arg0, %arg1, %c0_i32 : i32, i32, i32
  }
}

</mosaic_0001>

<bundles_post_ra>
// kernel: subtraction_reduce_gaussian.1
= control target key start
LH: loop header
LB: loop body
LE: loop exit
PB: predicated region body
PF: predicated region fallthrough
CT: control target
= control target key end

     0   :  { %s783_s15 = smov 0   ;;  %s785_s16 = smov 0   ;;  %s897_s0 = inlined_call_operand.vmem [shape: f32[2,16,128], index: 0, kind: input, shape index: {}]   ;;  %s898_s1 = inlined_call_operand.vmem [shape: f32[2,128,64], index: 1, kind: input, shape index: {}]   ;;  %s899_s2 = inlined_call_operand.vmem [shape: f32[128,64], index: 2, kind: input, shape index: {}]   ;;  %s900_s3 = inlined_call_operand.vmem [shape: f32[2,1,64], index: 3, kind: input, shape index: {}]   ;;  %s901_s4 = inlined_call_operand.vmem [shape: f32[2,16,64], index: 4, kind: output, shape index: {}]  }
   0x1   :  { %s787_s17 = smov 0  }
   0x2 LB: > { %s26_s18 = sadd.s32 1, %s752_s16  ;;  %p587_p0 = scmp.ge.s32.totalorder %s756_s17, 1  ;;  %s756_s17 = sphi %s787_s17, %s14_s17   ;;  %s752_s16 = sphi %s785_s16, %s903_s16   ;;  %s748_s15 = sphi %s783_s15, %s902_s15  }
   0x3   : > { %p28_p1 = scmp.ge.s32.totalorder %s26_s18, 2  ;;  %p201_p2 = scmp.lt.s32.totalorder %s756_s17, 3 }
   0x5   : > { %s905_s18 = smov (%p28_p1, %s26_s18), 0  ;;  %p202_p3 = pnand %p587_p0, %p201_p2 }
   0x6   : > { %p244_p4 = scmp.lt.s32.totalorder (!%p202_p3), %s748_s15, 1 }
   0x7   : > { %205 = sbr.rel (%p202_p3) target bundleno = 267 (0x10b), region = 36 }
   0xc   : > { %v306_v0 = vld [vmem:[%s899_s2 + $0x78] sm:$0xff]  ;;  %v305_v1 = vld [vmem:[%s899_s2 + $0x70] sm:$0xff]  ;;  %s907_s15 = smov (!%p244_p4, %s748_s15), 1  ;;  %v304_v2 = vld [vmem:[%s899_s2 + $0x68] sm:$0xff]  ;;  %vm472_vm0 = vcmask 523264  }
   0xd   : > { %636 = vmatprep.subr.mxu0 %v306_v0  ;;  %s598_s25 = sshll.u32 %s907_s15, 7  ;;  %v303_v3 = vld [vmem:[%s899_s2 + $0x60] sm:$0xff]  ;;  %v302_v6 = vld [vmem:[%s899_s2 + $0x58] sm:$0xff]  ;;  %v301_v8 = vld [vmem:[%s899_s2 + $0x50] sm:$0xff]  ;;  %s260_s14 = scalar_lea.vmem %s900_s3, %s907_s15 }
   0xe   : > { %637 = vmatpush3.msra.mxu0 %v306_v0  ;;  %s819_s30 = scalar_lea.vmem %s898_s1, %s598_s25  ;;  %v300_v10 = vld [vmem:[%s899_s2 + $0x48] sm:$0xff]  ;;  %v299_v12 = vld [vmem:[%s899_s2 + $0x40] sm:$0xff]  ;;  %v298_v14 = vld [vmem:[%s899_s2 + $0x38] sm:$0xff]  ;;  %s597_s25 = sshll.u32 %s907_s15, 4 }
   0xf   : > { %638 = vmatprep.subr.mxu0 %v305_v1  ;;  %v288_v4 = vld [vmem:[%s819_s30 + $0x78] sm:$0xff]  ;;  %v287_v5 = vld [vmem:[%s819_s30 + $0x70] sm:$0xff]  ;;  %v286_v7 = vld [vmem:[%s819_s30 + $0x68] sm:$0xff]  ;;  %s251_s5 = scalar_lea.vmem %s897_s0, %s597_s25  ;;  %s269_s20 = scalar_lea.vmem %s901_s4, %s597_s25 }
  0x10   : > { %639 = vmatpush3.msra.mxu0 %v305_v1  ;;  %671 = vmatprep.subr.mxu1 %v288_v4  ;;  %v285_v9 = vld [vmem:[%s819_s30 + $0x60] sm:$0xff]  ;;  %v284_v11 = vld [vmem:[%s819_s30 + $0x58] sm:$0xff]  ;;  %v283_v13 = vld [vmem:[%s819_s30 + $0x50] sm:$0xff] }
  0x11   : > { %640 = vmatprep.subr.mxu0 %v304_v2  ;;  %672 = vmatpush3.msra.mxu1 %v288_v4  ;;  %v282_v15 = vld [vmem:[%s819_s30 + $0x48] sm:$0xff]  ;;  %v297_v16 = vld [vmem:[%s899_s2 + $0x30] sm:$0xff]  ;;  %v281_v17 = vld [vmem:[%s819_s30 + $0x40] sm:$0xff] }
  0x12   : > { %641 = vmatpush3.msra.mxu0 %v304_v2  ;;  %673 = vmatprep.subr.mxu1 %v287_v5  ;;  %v296_v18 = vld [vmem:[%s899_s2 + $0x28] sm:$0xff]  ;;  %v280_v19 = vld [vmem:[%s819_s30 + $0x38] sm:$0xff]  ;;  %v295_v20 = vld [vmem:[%s899_s2 + $0x20] sm:$0xff] }
  0x13   : > { %642 = vmatprep.subr.mxu0 %v303_v3  ;;  %674 = vmatpush3.msra.mxu1 %v287_v5  ;;  %v279_v21 = vld [vmem:[%s819_s30 + $0x30] sm:$0xff]  ;;  %v294_v22 = vld [vmem:[%s899_s2 + $0x18] sm:$0xff]  ;;  %v278_v23 = vld [vmem:[%s819_s30 + $0x28] sm:$0xff] }
  0x14   : > { %643 = vmatpush3.msra.mxu0 %v303_v3  ;;  %675 = vmatprep.subr.mxu1 %v286_v7  ;;  %v293_v24 = vld [vmem:[%s899_s2 + $0x10] sm:$0xff]  ;;  %v277_v25 = vld [vmem:[%s819_s30 + $0x20] sm:$0xff]  ;;  %v292_v26 = vld [vmem:[%s899_s2 + $0x8] sm:$0xff] }
  0x15   : > { %644 = vmatprep.subr.mxu0 %v302_v6  ;;  %676 = vmatpush3.msra.mxu1 %v286_v7  ;;  %v271_v27 = vld [vmem:[%s251_s5] sm:$0xff]  ;;  %v272_v28 = vld [vmem:[%s251_s5 + $0x8] sm:$0xff]  ;;  %v276_v29 = vld [vmem:[%s819_s30 + $0x18] sm:$0xff] }
  0x16   : > { %645 = vmatpush3.msra.mxu0 %v302_v6  ;;  %677 = vmatprep.subr.mxu1 %v285_v9  ;;  %v291_v30 = vld [vmem:[%s899_s2] sm:$0xff]  ;;  %v289_v31 = vmul.f32 %v271_v27, %v271_v27  ;;  %v275_v32 = vld [vmem:[%s819_s30 + $0x10] sm:$0xff]  ;;  %v290_v33 = vmul.f32 %v272_v28, %v272_v28  ;;  %v274_v34 = vld [vmem:[%s819_s30 + $0x8] sm:$0xff] }
  0x17   : > { %646 = vmatprep.subr.mxu0 %v301_v8  ;;  %678 = vmatpush3.msra.mxu1 %v285_v9  ;;  %v273_v35 = vld [vmem:[%s819_s30] sm:$0xff] }
  0x18   : > { %647 = vmatpush3.msra.mxu0 %v301_v8  ;;  %679 = vmatprep.subr.mxu1 %v284_v11  ;;  %v594_v38 = vld [vmem:[%s260_s14] ss:$0 sm:$0xff] }
  0x19   : > { %648 = vmatprep.subr.mxu0 %v300_v10  ;;  %680 = vmatpush3.msra.mxu1 %v284_v11 }
  0x1a   : > { %649 = vmatpush3.msra.mxu0 %v300_v10  ;;  %681 = vmatprep.subr.mxu1 %v283_v13 }
  0x1b   : > { %650 = vmatprep.subr.mxu0 %v299_v12  ;;  %682 = vmatpush3.msra.mxu1 %v283_v13 }
  0x1c   : > { %651 = vmatpush3.msra.mxu0 %v299_v12  ;;  %683 = vmatprep.subr.mxu1 %v282_v15 }
  0x1d   : > { %652 = vmatprep.subr.mxu0 %v298_v14  ;;  %684 = vmatpush3.msra.mxu1 %v282_v15 }
  0x1e   : > { %653 = vmatpush3.msra.mxu0 %v298_v14  ;;  %685 = vmatprep.subr.mxu1 %v281_v17 }
  0x1f   : > { %654 = vmatprep.subr.mxu0 %v297_v16  ;;  %686 = vmatpush3.msra.mxu1 %v281_v17 }
  0x20   : > { %655 = vmatpush3.msra.mxu0 %v297_v16  ;;  %687 = vmatprep.subr.mxu1 %v280_v19 }
  0x21   : > { %656 = vmatprep.subr.mxu0 %v296_v18  ;;  %688 = vmatpush3.msra.mxu1 %v280_v19 }
  0x22   : > { %657 = vmatpush3.msra.mxu0 %v296_v18  ;;  %689 = vmatprep.subr.mxu1 %v279_v21 }
  0x23   : > { %658 = vmatprep.subr.mxu0 %v295_v20  ;;  %690 = vmatpush3.msra.mxu1 %v279_v21 }
  0x24   : > { %659 = vmatpush3.msra.mxu0 %v295_v20  ;;  %691 = vmatprep.subr.mxu1 %v278_v23 }
  0x25   : > { %660 = vmatprep.subr.mxu0 %v294_v22  ;;  %692 = vmatpush3.msra.mxu1 %v278_v23 }
  0x26   : > { %661 = vmatpush3.msra.mxu0 %v294_v22  ;;  %693 = vmatprep.subr.mxu1 %v277_v25 }
  0x27   : > { %662 = vmatprep.subr.mxu0 %v293_v24  ;;  %694 = vmatpush3.msra.mxu1 %v277_v25 }
  0x28   : > { %663 = vmatpush3.msra.mxu0 %v293_v24  ;;  %695 = vmatprep.subr.mxu1 %v276_v29 }
  0x29   : > { %664 = vmatprep.subr.mxu0 %v292_v26  ;;  %696 = vmatpush3.msra.mxu1 %v276_v29 }
  0x2a   : > { %665 = vmatpush3.msra.mxu0 %v292_v26  ;;  %697 = vmatprep.subr.mxu1 %v275_v32 }
  0x2b   : > { %666 = vmatprep.subr.mxu0 %v291_v30  ;;  %668 = vmatprep.mubr.f32.mxu0 %v289_v31 }
  0x2c   : > { %667 = vmatpush3.msra.mxu0 %v291_v30  ;;  %698 = vmatpush3.msra.mxu1 %v275_v32 }
  0x2d   : > { %669 = vmatmul.mubr.f32.vlgmr.msra.gmra.mxu0 %v290_v33  ;;  %699 = vmatprep.subr.mxu1 %v274_v34 }
  0x2e   : > { %703 = vmatprep.mubr.f32.mxu1 %v271_v27  ;;  %700 = vmatpush3.msra.mxu1 %v274_v34 }
  0x2f   : > { %701 = vmatprep.subr.mxu1 %v273_v35 }
  0x30   : > { %702 = vmatpush3.msra.mxu1 %v273_v35 }
  0x31   : > { %704 = vmatmul.mubr.f32.vlgmr.msra.gmra.mxu1 %v272_v28 }
  0xed   : > { %v670_v36 = vpop.f32.mrf.mxu0 }
  0xef   : > { %v373_v40 = vpop.f32.mrf.mxu0 }
  0xf1   : > { %v705_v37 = vpop.f32.mrf.mxu1 }
  0xf2   : > { %v454_v39 = vadd.f32 %v705_v37, %v670_v36 }
  0xf3   : > { %v448_v41 = vpop.f32.mrf.mxu1 }
  0xf4   : > { %v465_v42 = vadd.f32 %v594_v38, %v454_v39  ;;  %v449_v43 = vadd.f32 %v448_v41, %v373_v40 }
  0xf6   : > { %v467_v44 = vmin.f32 %v465_v42, 0.0  ;;  %v464_v45 = vadd.f32 %v594_v38, %v449_v43 }
  0xf8   : > { %v470_v46 = vmul.f32 1.442695, %v467_v44  ;;  %v466_v47 = vmin.f32 %v464_v45, 0.0 }
  0xfa   : > { %730 = vpow2.f32 %v470_v46  ;;  %v468_v48 = vmul.f32 1.442695, %v466_v47 }
  0xfc   : > { %732 = vpow2.f32 %v468_v48 }
 0x107   : > { %v731_v49 = vpop.eup %730 }
 0x108   : > { %474 = vst.msk [vmem:[%s269_s20 + $0x8] sm:$0xff] %vm472_vm0, %v731_v49 }
 0x109   : > { %v733_v50 = vpop.eup %732 }
 0x10a   : > { %473 = vst.msk [vmem:[%s269_s20] sm:$0xff] %vm472_vm0, %v733_v50 }
 0x10b PF: > { %s14_s17 = sadd.s32 1, %s756_s17   ;;  %s902_s15 = smov %s752_s16 }
 0x10c   : > { %p11_p5 = scmp.ge.s32.totalorder %s14_s17, 4   ;;  %s903_s16 = smov %s905_s18 }
 0x10e   :  { %13 = sbr.rel (!%p11_p5) target bundleno = 2 (0x2), region = 72 }

</bundles_post_ra>
